<compile_context>
chip_gen: v7x
topology: tpu7x:2x2x1
jax: 0.10.0
libtpu: 0.0.40
codegen_flags: <defaults>
</compile_context>

<pallas_src>
import jax
import jax.numpy as jnp
from jax import lax
from jax.experimental import pallas as pl
from jax.experimental.pallas import tpu as pltpu

d_model = 32          # C
context_window = 8    # T
HEAD_SIZE = 16        # head_size


def head_kernel(x_ref, wqkv_ref, o_ref):
    # x_ref: (B, T, C); wqkv_ref: (C, 3H) fused [scaled_query | key | value]; o_ref: (B, T, H)
    B, T, C = x_ref.shape
    H = o_ref.shape[-1]

    # Fused QKV projection: one matmul over all B*T rows.
    x2d = x_ref[...].reshape(B * T, C).astype(jnp.float32)                     # (B*T, C)
    qkv = jnp.dot(x2d, wqkv_ref[...], preferred_element_type=jnp.float32)      # (B*T, 3H)
    qkv = qkv.reshape(B, T, 3 * H)
    q = qkv[:, :, 0 * H:1 * H]   # already scaled by C**-0.5 (folded in wrapper)
    k = qkv[:, :, 1 * H:2 * H]
    v = qkv[:, :, 2 * H:3 * H]

    # Scores: contract over H, batched over B — no explicit k transpose.
    wei = lax.dot_general(q, k, (((2,), (2,)), ((0,), (0,))),
                          preferred_element_type=jnp.float32)                  # (B, T, T)

    # Causal (lower-triangular) mask, same as the tril buffer in the module.
    row = lax.broadcasted_iota(jnp.int32, (T, T), 0)
    col = lax.broadcasted_iota(jnp.int32, (T, T), 1)
    wei = jnp.where((col <= row)[None, :, :], wei, -jnp.inf)

    # Numerically stable softmax along the last axis.
    wei_max = jnp.max(wei, axis=-1, keepdims=True)
    p = jnp.exp(wei - wei_max)
    denom = jnp.sum(p, axis=-1, keepdims=True)
    wei = p * pl.reciprocal(denom, approx=False)                               # EUP recip

    # dropout(p=0.2): identity (eval mode)

    out = lax.dot_general(wei, v, (((2,), (1,)), ((0,), (0,))),
                          preferred_element_type=jnp.float32)                  # (B, T, H)
    o_ref[...] = out.astype(o_ref.dtype)


def head_forward(x, w_key, w_query, w_value):
    """x: (B, T, C) float32; w_*: (head_size, C) as in nn.Linear.weight (bias=False)."""
    B, T, C = x.shape
    H = w_key.shape[0]

    # Fold the attention scale into the query weight (module scales by C**-0.5, C = d_model).
    scale = jnp.float32(float(C) ** -0.5)
    # Fused, pre-transposed (C, 3H) weight: [ scaled query | key | value ].
    wqkv = jnp.concatenate([w_query.T * scale, w_key.T, w_value.T], axis=1)

    return pl.pallas_call(
        head_kernel,
        out_shape=jax.ShapeDtypeStruct((B, T, H), x.dtype),
        grid_spec=pltpu.PrefetchScalarGridSpec(
            num_scalar_prefetch=0,
            grid=(1,),  # single invocation: whole problem fits trivially in VMEM
            in_specs=[
                pl.BlockSpec((B, T, C), lambda i: (0, 0, 0)),
                pl.BlockSpec((C, 3 * H), lambda i: (0, 0)),
            ],
            out_specs=pl.BlockSpec((B, T, H), lambda i: (0, 0, 0)),
        ),
    )(x, wqkv)


def head_reference(x, w_key, w_query, w_value):
    """Plain-JAX reference matching the PyTorch forward (eval mode)."""
    B, T, C = x.shape
    k = x @ w_key.T
    q = x @ w_query.T
    v = x @ w_value.T
    wei = (q @ jnp.swapaxes(k, -2, -1)) * (C ** -0.5)
    tril = jnp.tril(jnp.ones((T, T), dtype=bool))
    wei = jnp.where(tril, wei, -jnp.inf)
    wei = jax.nn.softmax(wei, axis=-1)
    return wei @ v


if __name__ == "__main__":
    key = jax.random.PRNGKey(0)
    kx, kk, kq, kv = jax.random.split(key, 4)

    B = 2
    T = context_window
    C = d_model
    H = HEAD_SIZE

    x = jax.random.normal(kx, (B, T, C), dtype=jnp.float32)

    # deterministic "nn.Linear" style init: U(-1/sqrt(C), 1/sqrt(C)), weight shape (H, C)
    bound = 1.0 / (C ** 0.5)
    w_key_p = jax.random.uniform(kk, (H, C), minval=-bound, maxval=bound, dtype=jnp.float32)
    w_query_p = jax.random.uniform(kq, (H, C), minval=-bound, maxval=bound, dtype=jnp.float32)
    w_value_p = jax.random.uniform(kv, (H, C), minval=-bound, maxval=bound, dtype=jnp.float32)

    out = head_forward(x, w_key_p, w_query_p, w_value_p)
    out = jax.block_until_ready(out)

    ref = head_reference(x, w_key_p, w_query_p, w_value_p)
    assert out.shape == (B, T, H)
    assert jnp.allclose(out, ref, atol=1e-5, rtol=1e-5), "mismatch vs reference"

    print("KERNEL_OK")
</pallas_src>

<mosaic_0001>
module attributes {stable_mosaic.version = 11 : i64} {
  func.func @head_kernel(%arg0: i32, %arg1: memref<2x8x32xf32, #tpu.memory_space<vmem>>, %arg2: memref<32x48xf32, #tpu.memory_space<vmem>>, %arg3: memref<2x8x16xf32, #tpu.memory_space<vmem>>) attributes {dimension_semantics = [#tpu.dimension_semantics<arbitrary>], iteration_bounds = array<i64: 1>, scalar_prefetch = 0 : i64, scratch_operands = 0 : i64, tpu.core_type = #tpu.core_type<tc>, window_params = [{pipeline_mode = #tpu.pipeline_mode<synchronous>, transform_indices = @transform_0, window_bounds = array<i64: 2, 8, 32>}, {pipeline_mode = #tpu.pipeline_mode<synchronous>, transform_indices = @transform_1, window_bounds = array<i64: 32, 48>}, {pipeline_mode = #tpu.pipeline_mode<synchronous>, transform_indices = @transform_2, window_bounds = array<i64: 2, 8, 16>}]} {
    %c0 = arith.constant 0 : index
    %c0_0 = arith.constant 0 : index
    %c0_1 = arith.constant 0 : index
    %0 = vector.load %arg1[%c0, %c0_0, %c0_1] : memref<2x8x32xf32, #tpu.memory_space<vmem>>, vector<2x8x32xf32>
    %1 = vector.shape_cast %0 : vector<2x8x32xf32> to vector<16x32xf32>
    %c0_2 = arith.constant 0 : index
    %c0_3 = arith.constant 0 : index
    %2 = vector.load %arg2[%c0_2, %c0_3] : memref<32x48xf32, #tpu.memory_space<vmem>>, vector<32x48xf32>
    %cst = arith.constant dense<0.000000e+00> : vector<16x48xf32>
    %3 = tpu.matmul %1, %2, %cst {dimension_numbers = #tpu.dot_dimension_numbers<[1], [0], [0], [1], [0, 0, 1, 1], [], []>} : vector<16x32xf32>, vector<32x48xf32>, vector<16x48xf32> -> vector<16x48xf32>
    %4 = vector.shape_cast %3 : vector<16x48xf32> to vector<2x8x48xf32>
    %5 = vector.extract_strided_slice %4 {offsets = [0, 0, 0], sizes = [2, 8, 16], strides = [1, 1, 1]} : vector<2x8x48xf32> to vector<2x8x16xf32>
    %6 = vector.extract_strided_slice %4 {offsets = [0, 0, 16], sizes = [2, 8, 16], strides = [1, 1, 1]} : vector<2x8x48xf32> to vector<2x8x16xf32>
    %7 = vector.extract_strided_slice %4 {offsets = [0, 0, 32], sizes = [2, 8, 16], strides = [1, 1, 1]} : vector<2x8x48xf32> to vector<2x8x16xf32>
    %cst_4 = arith.constant dense<0.000000e+00> : vector<2x8x8xf32>
    %8 = tpu.matmul %5, %6, %cst_4 {dimension_numbers = #tpu.dot_dimension_numbers<[2], [2], [1], [1], [0, 0, 0, 1, 1, 1], [0], [0]>} : vector<2x8x16xf32>, vector<2x8x16xf32>, vector<2x8x8xf32> -> vector<2x8x8xf32>
    %9 = tpu.iota {dimensions = array<i32: 0>} : vector<8x8xi32>
    %10 = tpu.iota {dimensions = array<i32: 1>} : vector<8x8xi32>
    %11 = arith.cmpi sle, %10, %9 : vector<8x8xi32>
    %12 = vector.shape_cast %11 : vector<8x8xi1> to vector<1x8x8xi1>
    %cst_5 = arith.constant 0xFF800000 : f32
    %13 = vector.shape_cast %12 : vector<1x8x8xi1> to vector<1x8x8xi1>
    %14 = vector.broadcast %13 : vector<1x8x8xi1> to vector<2x8x8xi1>
    %15 = vector.broadcast %cst_5 : f32 to vector<2x8x8xf32>
    %16 = arith.select %14, %8, %15 : vector<2x8x8xi1>, vector<2x8x8xf32>
    %cst_6 = arith.constant dense<0xFF800000> : vector<2x8xf32>
    %17 = vector.multi_reduction <maximumf>, %16, %cst_6 [2] : vector<2x8x8xf32> to vector<2x8xf32>
    %18 = vector.shape_cast %17 : vector<2x8xf32> to vector<2x8x1xf32>
    %19 = vector.broadcast %18 : vector<2x8x1xf32> to vector<2x8x8xf32>
    %20 = arith.subf %16, %19 : vector<2x8x8xf32>
    %21 = math.exp %20 : vector<2x8x8xf32>
    %cst_7 = arith.constant dense<0.000000e+00> : vector<2x8xf32>
    %22 = vector.multi_reduction <add>, %21, %cst_7 [2] : vector<2x8x8xf32> to vector<2x8xf32>
    %23 = vector.shape_cast %22 : vector<2x8xf32> to vector<2x8x1xf32>
    %24 = tpu.reciprocal %23 : vector<2x8x1xf32> -> vector<2x8x1xf32>
    %25 = vector.broadcast %24 : vector<2x8x1xf32> to vector<2x8x8xf32>
    %26 = arith.mulf %21, %25 : vector<2x8x8xf32>
    %cst_8 = arith.constant dense<0.000000e+00> : vector<2x8x16xf32>
    %27 = tpu.matmul %26, %7, %cst_8 {dimension_numbers = #tpu.dot_dimension_numbers<[2], [1], [1], [2], [0, 0, 0, 1, 1, 2], [0], [0]>} : vector<2x8x8xf32>, vector<2x8x16xf32>, vector<2x8x16xf32> -> vector<2x8x16xf32>
    %c0_9 = arith.constant 0 : index
    %c0_10 = arith.constant 0 : index
    %c0_11 = arith.constant 0 : index
    %28 = vector.load %arg3[%c0_9, %c0_10, %c0_11] : memref<2x8x16xf32, #tpu.memory_space<vmem>>, vector<2x8x16xf32>
    tpu.vector_store %arg3[%c0_9, %c0_10, %c0_11], %27 {strides = array<i32>} : memref<2x8x16xf32, #tpu.memory_space<vmem>>, vector<2x8x16xf32>,
    return
  }
  func.func @transform_0(%arg0: i32) -> (i32, i32, i32) {
    %c0_i32 = arith.constant 0 : i32
    %c0_i32_0 = arith.constant 0 : i32
    %c0_i32_1 = arith.constant 0 : i32
    %c0_i32_2 = arith.constant 0 : i32
    return %c0_i32, %c0_i32_0, %c0_i32_1 : i32, i32, i32
  }
  func.func @transform_1(%arg0: i32) -> (i32, i32) {
    %c0_i32 = arith.constant 0 : i32
    %c0_i32_0 = arith.constant 0 : i32
    %c0_i32_1 = arith.constant 0 : i32
    return %c0_i32, %c0_i32_0 : i32, i32
  }
  func.func @transform_2(%arg0: i32) -> (i32, i32, i32) {
    %c0_i32 = arith.constant 0 : i32
    %c0_i32_0 = arith.constant 0 : i32
    %c0_i32_1 = arith.constant 0 : i32
    %c0_i32_2 = arith.constant 0 : i32
    return %c0_i32, %c0_i32_0, %c0_i32_1 : i32, i32, i32
  }
}

</mosaic_0001>

<bundles_post_ra>
// kernel: tpu_custom_call.1
= control target key start
LH: loop header
LB: loop body
LE: loop exit
PB: predicated region body
PF: predicated region fallthrough
CT: control target
= control target key end

     0   :  { %7 = vsyncpa [#allocation3], 0  ;;  %s722_s0 = inlined_call_operand.hbm [shape: f32[2,8,32], index: 0, kind: input, shape index: {}]   ;;  %s723_s1 = inlined_call_operand.hbm [shape: f32[32,48], index: 1, kind: input, shape index: {}]   ;;  %s724_s2 = inlined_call_operand.hbm [shape: f32[2,8,16], index: 2, kind: output, shape index: {}]  }
   0x1   :  { %8 = vsyncpa [#allocation6], 0 }
   0x2   :  { %9 = vsyncpa [#allocation4], 0  ;;  %s637_s9 = smov [#allocation2]   ;;  %s565_s13 = scalar_lea.hbm %s722_s0, 256 }
   0x3   :  { %s15_s10 = sshll.u32 %s637_s9, 4  ;;  %p566_p0 = scmp.ne.s32.totalorder %s722_s0, %s565_s13  ;;  %s16_s10 = int_to_ptr.vmem [resolvable:$true] %s15_s10 }
   0x4   :  { %p569_p1 = scmp.lt.u32.totalorder %s565_s13, %s722_s0 }
   0x6   :  { %p571_p2 = pnand %p569_p1, %p566_p0 }
   0x8   :  { %574 = shalt.err (!%p571_p2)
}
   0x9   :  { %s575_s18 = scalar_lea.vmem %s16_s10, 256  ;;  %p580_p4 = scmp.lt.s32.totalorder %s16_s10, %s16_s10 }
   0xa   :  { %p576_p3 = scmp.ne.s32.totalorder %s16_s10, %s575_s18  ;;  %p581_p5 = scmp.lt.s32.totalorder %s575_s18, %s575_s18 }
   0xc   :  { %p582_p6 = por %p581_p5, %p580_p4 }
   0xe   :  { %p583_p7 = pnand %p582_p6, %p576_p3 }
  0x10   :  { %586 = shalt.err (!%p583_p7)
}
  0x11   :  { %s638_s19 = smov 128   ;;  %s639_s20 = smov 8  }
  0x12   :  { %21 = dma.hbm_to_vmem [thread:$0]  %s722_s0, 256, %s16_s10, [#allocation3], %s638_s19, %s638_s19, %s639_s20  }
  0x13   :  { %s640_s23 = smov [#allocation5]   ;;  %s587_s27 = scalar_lea.hbm %s723_s1, 512 }
  0x14   :  { %s27_s24 = sshll.u32 %s640_s23, 4  ;;  %p588_p8 = scmp.ne.s32.totalorder %s723_s1, %s587_s27  ;;  %s28_s24 = int_to_ptr.vmem [resolvable:$true] %s27_s24 }
  0x15   :  { %p591_p9 = scmp.lt.u32.totalorder %s587_s27, %s723_s1 }
  0x17   :  { %p593_p10 = pnand %p591_p9, %p588_p8 }
  0x19   :  { %596 = shalt.err (!%p593_p10)
}
  0x1a   :  { %s597_s4 = scalar_lea.vmem %s28_s24, 512  ;;  %p602_p12 = scmp.lt.s32.totalorder %s28_s24, %s28_s24 }
  0x1b   :  { %p598_p11 = scmp.ne.s32.totalorder %s28_s24, %s597_s4  ;;  %p603_p13 = scmp.lt.s32.totalorder %s597_s4, %s597_s4 }
  0x1d   :  { %p604_p0 = por %p603_p13, %p602_p12 }
  0x1f   :  { %p605_p1 = pnand %p604_p0, %p598_p11 }
  0x21   :  { %608 = shalt.err (!%p605_p1)
}
  0x22   :  { %33 = dma.hbm_to_vmem [thread:$0]  %s723_s1, 512, %s28_s24, [#allocation6], %s638_s19, %s638_s19, %s639_s20  }
  0x23   :  { %631 = dma.done.wait [#allocation3], 256  }
  0x24   :  { %632 = vsyncadd [#allocation3], 4294967040 }
  0x25   :  { %633 = dma.done.wait [#allocation6], 512  }
  0x26   :  { %634 = vsyncadd [#allocation6], 4294966784  ;;  %vm46_vm0 = vcmask 261120   ;;  %v42_v0 = vld [vmem:[#allocation5] sm:$0xff]  ;;  %v43_v1 = vld [vmem:[#allocation5 + $0x8] sm:$0xff]  ;;  %v641_v8 = vmov 0.0   ;;  %v283_v13 = vlaneseq }
  0x27   :  { %v44_v2 = vld [vmem:[#allocation5 + $0x10] sm:$0xff]  ;;  %v540_v3 = vpack.c.bf16 %v43_v1, %v42_v0  ;;  %v45_v4 = vld [vmem:[#allocation5 + $0x18] sm:$0xff]  ;;  %520 = vmatprep.subr.mxu1 %v641_v8  ;;  %vm642_vm1 = vmmov 0   ;;  %s643_s1 = smov 112   ;;  %vm131_vm2 = vcmask 130048   ;;  %vm292_vm4 = vcmask 64512  }
  0x28   :  { %v40_v5 = vld [vmem:[#allocation2] sm:$0xff]  ;;  %v544_v6 = vpack.c.bf16 %v45_v4, %v44_v2  ;;  %v41_v7 = vld [vmem:[#allocation2 + $0x8] sm:$0xff]  ;;  %522 = vmatprep.mubr.msk.f32.mxu1 %vm642_vm1, %v641_v8  ;;  %v284_v14 = vshrl.u32 %v283_v13, 7  ;;  %v286_v15 = vand.u32 127, %v283_v13  ;;  %s644_s6 = smov 96   ;;  %s645_s7 = smov [#allocation7]  }
  0x29   :  { %517 = vmatprep.mubr.msk.f32.mxu0 %vm46_vm0, %v40_v5  ;;  %541 = vmatprep.subr.bf16.mxu0 %v540_v3  ;;  %s474_s8 = sshll.u32 %s645_s7, 4  ;;  %s475_s8 = int_to_ptr.vmem [resolvable:$true] %s474_s8 }
  0x2a   :  { %543 = vmatpush3.bf16.msra.mxu0 %v540_v3  ;;  %vm287_vm3 = vcmp.le.s32.totalorder %v286_v15, %v284_v14  ;;  %s609_s9 = scalar_lea.vmem %s475_s8, 256  ;;  %p614_p3 = scmp.lt.s32.totalorder %s475_s8, %s475_s8 }
  0x2b   :  { %545 = vmatprep.subr.bf16.mxu0 %v544_v6  ;;  %p610_p2 = scmp.ne.s32.totalorder %s475_s8, %s609_s9  ;;  %p615_p4 = scmp.lt.s32.totalorder %s609_s9, %s609_s9 }
  0x2d   :  { %p616_p5 = por %p615_p4, %p614_p3 }
  0x2e   :  { %547 = vmatpush3.bf16.msra.mxu0 %v544_v6 }
  0x2f   :  { %530 = vmatprep.subr.mxu0 %v641_v8  ;;  %p617_p6 = pnand %p616_p5, %p610_p2 }
  0x31   :  { %518 = vmatmul.mubr.msk.f32.vlgmr.msra.gmra.mrb[0].mxu0 %vm46_vm0, %v41_v7 }
  0x32   :  { %532 = vmatprep.mubr.msk.f32.mxu0 %vm642_vm1, %v641_v8 }
 0x104   :  { %v519_v9 = vpop.f32.mrb[0].mxu0 }
 0x105   :  { %v119_v10 = vpop.f32.mrb[1].mxu0 }
 0x106   :  { %129 = vrot.lane.b32.xlu0 %v119_v10, %s643_s1 }
 0x10a   :  { %207 = vrot.lane.b32.xlu0 %v519_v9, %s643_s1 }
 0x178   :  { %v130_v11 = vpop.permute.xlu0 %129 }
 0x179   :  { %521 = vmatpush3.xpose.msk.msra.mxu1 %vm131_vm2, %v130_v11 }
 0x17a   :  { %525 = vmatprep.subr.mxu1 %v641_v8 }
 0x17c   :  { %523 = vmatmul.mubr.msk.f32.vlgmr.msra.gmra.mrb[0].mxu1 %vm131_vm2, %v119_v10  ;;  %v208_v12 = vpop.permute.xlu0 %207 }
 0x17d   :  { %526 = vmatpush3.xpose.msk.msra.mxu1 %vm131_vm2, %v208_v12  ;;  %527 = vmatprep.mubr.msk.f32.mxu1 %vm642_vm1, %v641_v8 }
 0x17e   :  { %535 = vmatprep.subr.mxu1 %v641_v8 }
 0x180   :  { %528 = vmatmul.mubr.msk.f32.vlgmr.msra.gmra.mrb[2].mxu1 %vm131_vm2, %v519_v9 }
 0x181   :  { %537 = vmatprep.mubr.msk.f32.mxu1 %vm642_vm1, %v641_v8 }
 0x24f   :  { %v202_v16 = vpop.f32.mrb[0].mxu1 }
 0x250   :  { %v290_v17 = vsel %vm287_vm3, %v202_v16, -inf  ;;  %v524_v18 = vpop.f32.mrb[1].mxu1 }
 0x251   :  { %v293_v19 = vsel %vm292_vm4, %v290_v17, -inf }
 0x252   :  { %294 = vmax.xlane.f32.xlu1 %v293_v19 }
 0x253   :  { %v279_v20 = vpop.f32.mrb[2].mxu1 }
 0x254   :  { %v291_v21 = vsel %vm287_vm3, %v279_v20, -inf  ;;  %v529_v22 = vpop.f32.mrb[3].mxu1 }
 0x255   :  { %v296_v23 = vsel %vm292_vm4, %v291_v21, -inf }
 0x256   :  { %297 = vmax.xlane.f32.xlu1 %v296_v23 }
 0x267   :  { %315 = vrot.lane.b32.xlu1 %v119_v10, %s644_s6 }
 0x2df   :  { %v295_v24 = vpop.xlane.xlu1 %294 }
 0x2e0   :  { %v299_v25 = vsub.f32 %v290_v17, %v295_v24 }
 0x2e2   :  { %v301_v26 = vmul.f32 1.442695, %v299_v25 }
 0x2e3   :  { %v298_v27 = vpop.xlane.xlu1 %297 }
 0x2e4   :  { %557 = vpow2.f32 %v301_v26  ;;  %v300_v28 = vsub.f32 %v291_v21, %v298_v27 }
 0x2e6   :  { %v303_v29 = vmul.f32 1.442695, %v300_v28 }
 0x2e7   :  { %v316_v30 = vpop.permute.xlu1 %315 }
 0x2e8   :  { %559 = vpow2.f32 %v303_v29  ;;  %531 = vmatpush3.msra.mxu0 %v316_v30 }
 0x2ee   :  { %v558_v31 = vpop.eup %557 }
 0x2ef   :  { %v305_v32 = vsel %vm292_vm4, %v558_v31, 0.0 }
 0x2f0   :  { %306 = vadd.xlane.f32.xlu0 %v305_v32 }
 0x2f2   :  { %v560_v33 = vpop.eup %559 }
 0x2f3   :  { %v308_v34 = vsel %vm292_vm4, %v560_v33, 0.0 }
 0x2f4   :  { %309 = vadd.xlane.f32.xlu1 %v308_v34 }
 0x305   :  { %391 = vrot.lane.b32.xlu1 %v519_v9, %s644_s6 }
 0x37d   :  { %v307_v35 = vpop.xlane.xlu0 %306 }
 0x37e   :  { %561 = vrcp.f32 %v307_v35 }
 0x381   :  { %v310_v36 = vpop.xlane.xlu1 %309 }
 0x382   :  { %563 = vrcp.f32 %v310_v36 }
 0x385   :  { %v392_v37 = vpop.permute.xlu1 %391 }
 0x386   :  { %536 = vmatpush3.msra.mxu1 %v392_v37 }
 0x388   :  { %v562_v38 = vpop.eup %561 }
 0x389   :  { %v313_v39 = vmul.f32 %v562_v38, %v558_v31 }
 0x38b   :  { %533 = vmatmul.mubr.msk.f32.vlgmr.msra.gmra.mrb[2].mxu0 %vm292_vm4, %v313_v39 }
 0x38c   :  { %v564_v40 = vpop.eup %563 }
 0x38d   :  { %v314_v41 = vmul.f32 %v564_v40, %v560_v33 }
 0x38f   :  { %538 = vmatmul.mubr.msk.f32.vlgmr.msra.gmra.mrb[4].mxu1 %vm292_vm4, %v314_v41 }
 0x45e   :  { %v387_v42 = vpop.f32.mrb[2].mxu0 }
 0x45f   :  { %467 = vst.msk [vmem:[#allocation7] sm:$0xff] %vm131_vm2, %v387_v42  ;;  %v534_v43 = vpop.f32.mrb[3].mxu0 }
 0x462   :  { %v463_v44 = vpop.f32.mrb[4].mxu1 }
 0x463   :  { %468 = vst.msk [vmem:[#allocation7 + $0x8] sm:$0xff] %vm131_vm2, %v463_v44  ;;  %v539_v45 = vpop.f32.mrb[5].mxu1 }
 0x464   :  { %620 = shalt.err (!%p617_p6)
}
 0x465   :  { %s621_s12 = scalar_lea.hbm %s724_s2, 256 }
 0x466   :  { %p622_p7 = scmp.ne.s32.totalorder %s724_s2, %s621_s12  ;;  %p625_p8 = scmp.lt.u32.totalorder %s621_s12, %s724_s2 }
 0x468   :  { %p627_p9 = pnand %p625_p8, %p622_p7 }
 0x46a   :  { %630 = shalt.err (!%p627_p9)
}
 0x46b   :  { %480 = dma.vmem_to_hbm [thread:$0]  %s475_s8, 256, %s724_s2, [#allocation4], %s638_s19, %s638_s19, %s639_s20  }
 0x46c   :  { %635 = dma.done.wait [#allocation4], 256  }
 0x46d   :  { %636 = vsyncadd [#allocation4], 4294967040 }
 0x46e   :  { %484 = vsyncpa [#allocation3], 1 }
 0x46f   :  { %485 = vsyncpa [#allocation6], 1 }
 0x470   :  { %486 = vsyncpa [#allocation4], 1 }

</bundles_post_ra>
